<compile_context>
chip_gen: v7x
topology: tpu7x:2x2x1
jax: 0.10.0
libtpu: 0.0.40
codegen_flags: <defaults>
</compile_context>

<pallas_src>
import functools

import jax
import jax.numpy as jnp
from jax.experimental import pallas as pl
from jax.experimental.pallas import tpu as pltpu


def _round_up(x: int, m: int) -> int:
    return ((x + m - 1) // m) * m


# ----------------------------------------------------------------------------
# Kernel
# ----------------------------------------------------------------------------
def actor_mlp_kernel(x_ref, w1_ref, b1_ref, w2_ref, b2_ref, w3_ref, b3_ref,
                     prob_ref, *, use_relu: bool):
    """Fused MLP tile: fc1 -> act -> fc2 -> act -> fc3 -> softmax(dim=-1).

    x_ref:    (TM, in_dim)       bf16 activation tile
    w*_ref:   bf16 weights (lane-dense, hidden padded to 128), grid-resident
    b*_ref:   (1, dim) f32 biases (b3 padded columns are -1e30)
    prob_ref: (TM, out_pad) f32 lane-dense output slab
    """
    act = (lambda v: jnp.maximum(v, 0.0)) if use_relu else jnp.tanh

    # fc1 + activation -- bf16 MXU operands, f32 accumulation.
    h1 = jnp.dot(x_ref[...], w1_ref[...],
                 preferred_element_type=jnp.float32) + b1_ref[...]
    h1 = act(h1)

    # fc2 + activation
    h2 = jnp.dot(h1.astype(w2_ref.dtype), w2_ref[...],
                 preferred_element_type=jnp.float32) + b2_ref[...]
    h2 = act(h2)

    # fc3 + numerically-stable softmax over the (lane-padded) last axis.
    # Padded columns carry bias -1e30 (f32) and zero w3 columns, so their exp
    # underflows to exactly 0 and the softmax equals the unpadded one.
    logits = jnp.dot(h2.astype(w3_ref.dtype), w3_ref[...],
                     preferred_element_type=jnp.float32) + b3_ref[...]
    m = jnp.max(logits, axis=-1, keepdims=True)
    e = jnp.exp(logits - m)
    s = jnp.sum(e, axis=-1, keepdims=True)
    # Exact division (downstream PPO takes log(prob); kernel is not EUP-bound).
    prob_ref[...] = (e / s).astype(prob_ref.dtype)


# ----------------------------------------------------------------------------
# One-time parameter preparation (hoisted out of the per-forward path)
# ----------------------------------------------------------------------------
def prepare_actor_mlp_params(w1, b1, w2, b2, w3, b3, *,
                             weight_dtype=jnp.bfloat16):
    """Pad hidden/action dims to lane-dense multiples of 128 and cast weights.

    Padding is numerically exact: padded hidden units get zero weights and
    zero bias -> pre-activation 0 -> act(0)=0 -> zero contribution downstream.
    Padded logit columns get zero weights and a -1e30 f32 bias -> exp -> 0.
    """
    in_dim, hidden = w1.shape
    action_dim = w3.shape[1]
    hid_pad = _round_up(hidden, 128)
    out_pad = _round_up(action_dim, 128)

    w1p = jnp.zeros((in_dim, hid_pad), weight_dtype)
    w1p = w1p.at[:, :hidden].set(w1.astype(weight_dtype))
    b1p = jnp.zeros((1, hid_pad), jnp.float32)
    b1p = b1p.at[:, :hidden].set(b1.reshape(1, -1).astype(jnp.float32))

    w2p = jnp.zeros((hid_pad, hid_pad), weight_dtype)
    w2p = w2p.at[:hidden, :hidden].set(w2.astype(weight_dtype))
    b2p = jnp.zeros((1, hid_pad), jnp.float32)
    b2p = b2p.at[:, :hidden].set(b2.reshape(1, -1).astype(jnp.float32))

    w3p = jnp.zeros((hid_pad, out_pad), weight_dtype)
    w3p = w3p.at[:hidden, :action_dim].set(w3.astype(weight_dtype))
    # Keep b3 in f32: -1e30 in bf16 would become -inf and risk NaNs.
    b3p = jnp.full((1, out_pad), -1e30, jnp.float32)
    b3p = b3p.at[:, :action_dim].set(b3.reshape(1, -1).astype(jnp.float32))

    return {
        "w1": w1p, "b1": b1p, "w2": w2p, "b2": b2p, "w3": w3p, "b3": b3p,
        "in_dim": in_dim, "hidden": hidden, "action_dim": action_dim,
        "hid_pad": hid_pad, "out_pad": out_pad,
    }


# ----------------------------------------------------------------------------
# Forward wrapper
# ----------------------------------------------------------------------------
def _choose_tile_rows(batch: int, block_rows: int) -> int:
    """Batch-tile rows: multiple of 8, capped at block_rows, and (when the
    batch allows) at most half the batch so the grid has >= 2 steps for the
    two-TensorCore 'parallel' sharding on v7x."""
    if batch <= 8:
        return 8
    half = _round_up(-(-batch // 2), 8)
    return max(8, min(_round_up(block_rows, 8), half))


def _vmem_estimate_bytes(tm, in_dim, hid_pad, out_pad, w_itemsize=2):
    x_bytes = 2 * tm * in_dim * 2                      # bf16 x, double-buffered
    out_bytes = 2 * tm * out_pad * 4                   # f32 out, double-buffered
    w_bytes = 2 * (in_dim * hid_pad + hid_pad * hid_pad
                   + hid_pad * out_pad) * w_itemsize   # resident weights (x2 bufs)
    b_bytes = 2 * (2 * hid_pad + out_pad) * 4
    tmp_bytes = 4 * tm * max(hid_pad, out_pad) * 4     # h1/h2/logits/exp temporaries
    return x_bytes + out_bytes + w_bytes + b_bytes + tmp_bytes


def actor_mlp_forward(x, prepared, *, use_relu: bool = False,
                      block_rows: int = 4096, return_padded: bool = False):
    """Batch-tiled, weight-resident fused Actor_MLP forward.

    `prepared` is the dict from prepare_actor_mlp_params (pad/cast done once).
    """
    batch, in_dim = x.shape
    assert in_dim == prepared["in_dim"]
    hid_pad = prepared["hid_pad"]
    out_pad = prepared["out_pad"]
    action_dim = prepared["action_dim"]
    hidden = prepared["hidden"]
    w1, b1 = prepared["w1"], prepared["b1"]
    w2, b2 = prepared["w2"], prepared["b2"]
    w3, b3 = prepared["w3"], prepared["b3"]

    # bf16 activations at the pallas_call boundary: halves x DMA, no per-tile cast.
    x = x.astype(w1.dtype)

    # --- batch tiling.
    tm = _choose_tile_rows(batch, block_rows)
    padded_batch = _round_up(batch, tm)
    if padded_batch != batch:
        x = jnp.pad(x, ((0, padded_batch - batch), (0, 0)))
    grid = (padded_batch // tm,)

    # --- explicit VMEM limit: >= 16 MiB so large tiles also pass on v5e's
    # 16 MiB scoped default; capped well under every generation's physical VMEM.
    est = _vmem_estimate_bytes(tm, in_dim, hid_pad, out_pad)
    vmem_limit = int(min(48 * 1024 * 1024, max(16 * 1024 * 1024, 2 * est)))

    # --- cost estimate (helps XLA scheduling around the call).
    flops = 2 * padded_batch * (in_dim * hid_pad + hid_pad * hid_pad
                                + hid_pad * out_pad)
    transcendentals = padded_batch * (out_pad + (0 if use_relu else 2 * hid_pad))
    bytes_accessed = (
        padded_batch * in_dim * 2
        + (w1.size + w2.size + w3.size) * 2
        + (b1.size + b2.size + b3.size) * 4
        + padded_batch * out_pad * 4)

    kernel = functools.partial(actor_mlp_kernel, use_relu=use_relu)

    # Weights / biases use constant index_maps -> resident in VMEM for the
    # whole grid (DMA'd once); x / prob tiles are auto double-buffered.
    prob_padded = pl.pallas_call(
        kernel,
        out_shape=jax.ShapeDtypeStruct((padded_batch, out_pad), jnp.float32),
        grid=grid,
        in_specs=[
            pl.BlockSpec((tm, in_dim), lambda i: (i, 0)),        # x tile
            pl.BlockSpec((in_dim, hid_pad), lambda i: (0, 0)),   # w1 (resident)
            pl.BlockSpec((1, hid_pad), lambda i: (0, 0)),        # b1
            pl.BlockSpec((hid_pad, hid_pad), lambda i: (0, 0)),  # w2
            pl.BlockSpec((1, hid_pad), lambda i: (0, 0)),        # b2
            pl.BlockSpec((hid_pad, out_pad), lambda i: (0, 0)),  # w3
            pl.BlockSpec((1, out_pad), lambda i: (0, 0)),        # b3
        ],
        out_specs=pl.BlockSpec((tm, out_pad), lambda i: (i, 0)),
        compiler_params=pltpu.CompilerParams(
            dimension_semantics=("parallel",),
            vmem_limit_bytes=vmem_limit),
        cost_estimate=pl.CostEstimate(
            flops=flops,
            transcendentals=transcendentals,
            bytes_accessed=bytes_accessed),
    )(x, w1, b1, w2, b2, w3, b3)

    if return_padded:
        # Consumers that tolerate the padded slab (padded cols are exactly 0)
        # can skip the slice kernel entirely.
        return prob_padded
    return prob_padded[:batch, :action_dim]


# ----------------------------------------------------------------------------
# Init + pure-JAX reference
# ----------------------------------------------------------------------------
def init_actor_mlp_params(key, actor_input_dim, mlp_hidden_dim, action_dim,
                          use_orthogonal_init: bool = True):
    """Orthogonal init mirroring the PyTorch module (gain 1 / 1 / 0.01, zero bias).

    Returns raw f32 params in (in_features, out_features) layout; call
    prepare_actor_mlp_params() once to get the padded bf16 kernel params.
    """
    k1, k2, k3 = jax.random.split(key, 3)
    if use_orthogonal_init:
        ortho = jax.nn.initializers.orthogonal
        w1 = ortho(scale=1.0)(k1, (actor_input_dim, mlp_hidden_dim), jnp.float32)
        w2 = ortho(scale=1.0)(k2, (mlp_hidden_dim, mlp_hidden_dim), jnp.float32)
        w3 = ortho(scale=0.01)(k3, (mlp_hidden_dim, action_dim), jnp.float32)
    else:
        w1 = jax.random.normal(k1, (actor_input_dim, mlp_hidden_dim), jnp.float32) * 0.1
        w2 = jax.random.normal(k2, (mlp_hidden_dim, mlp_hidden_dim), jnp.float32) * 0.1
        w3 = jax.random.normal(k3, (mlp_hidden_dim, action_dim), jnp.float32) * 0.1
    b1 = jnp.zeros((mlp_hidden_dim,), jnp.float32)
    b2 = jnp.zeros((mlp_hidden_dim,), jnp.float32)
    b3 = jnp.zeros((action_dim,), jnp.float32)
    return (w1, b1, w2, b2, w3, b3)


def actor_mlp_reference(x, raw_params, *, use_relu: bool = False,
                        weight_dtype=jnp.bfloat16):
    """Pure-JAX reference mirroring the kernel's bf16-operand / f32-accum math."""
    w1, b1, w2, b2, w3, b3 = raw_params
    act = (lambda v: jnp.maximum(v, 0.0)) if use_relu else jnp.tanh
    h1 = act(jnp.dot(x.astype(weight_dtype), w1.astype(weight_dtype),
                     preferred_element_type=jnp.float32) + b1)
    h2 = act(jnp.dot(h1.astype(weight_dtype), w2.astype(weight_dtype),
                     preferred_element_type=jnp.float32) + b2)
    logits = jnp.dot(h2.astype(weight_dtype), w3.astype(weight_dtype),
                     preferred_element_type=jnp.float32) + b3
    return jax.nn.softmax(logits, axis=-1)


if __name__ == "__main__":
    # Small shapes consistent with the module's forward: (batch, actor_input_dim).
    batch = 8
    actor_input_dim = 32
    mlp_hidden_dim = 64
    action_dim = 8
    use_relu = False  # args.use_relu = 0 -> Tanh (module's default branch)

    key = jax.random.PRNGKey(0)
    k_x, k_p = jax.random.split(key)

    x = jax.random.normal(k_x, (batch, actor_input_dim), jnp.float32)
    raw_params = init_actor_mlp_params(k_p, actor_input_dim, mlp_hidden_dim,
                                       action_dim, use_orthogonal_init=True)
    prepared = prepare_actor_mlp_params(*raw_params)   # one-time prep

    prob = actor_mlp_forward(x, prepared, use_relu=use_relu)
    prob = jax.block_until_ready(prob)

    # Sanity checks (bf16-operand / f32-accum math in both kernel and reference).
    ref = actor_mlp_reference(x, raw_params, use_relu=use_relu)
    assert prob.shape == (batch, action_dim)
    assert jnp.allclose(prob, ref, atol=1e-4, rtol=1e-4)
    assert jnp.allclose(jnp.sum(prob, axis=-1), 1.0, atol=1e-5)

    print("KERNEL_OK")
</pallas_src>

<mosaic_0001>
module attributes {stable_mosaic.version = 11 : i64} {
  func.func @actor_mlp_kernel(%arg0: i32, %arg1: memref<8x32xbf16, #tpu.memory_space<vmem>>, %arg2: memref<32x128xbf16, #tpu.memory_space<vmem>>, %arg3: memref<1x128xf32, #tpu.memory_space<vmem>>, %arg4: memref<128x128xbf16, #tpu.memory_space<vmem>>, %arg5: memref<1x128xf32, #tpu.memory_space<vmem>>, %arg6: memref<128x128xbf16, #tpu.memory_space<vmem>>, %arg7: memref<1x128xf32, #tpu.memory_space<vmem>>, %arg8: memref<8x128xf32, #tpu.memory_space<vmem>>) attributes {dimension_semantics = [#tpu.dimension_semantics<parallel>], iteration_bounds = array<i64: 1>, scalar_prefetch = 0 : i64, scratch_operands = 0 : i64, tpu.core_type = #tpu.core_type<tc>, window_params = [{transform_indices = @transform_0, window_bounds = array<i64: 8, 32>}, {pipeline_mode = #tpu.pipeline_mode<synchronous>, transform_indices = @transform_1, window_bounds = array<i64: 32, 128>}, {pipeline_mode = #tpu.pipeline_mode<synchronous>, transform_indices = @transform_2, window_bounds = array<i64: 1, 128>}, {pipeline_mode = #tpu.pipeline_mode<synchronous>, transform_indices = @transform_3, window_bounds = array<i64: 128, 128>}, {pipeline_mode = #tpu.pipeline_mode<synchronous>, transform_indices = @transform_4, window_bounds = array<i64: 1, 128>}, {pipeline_mode = #tpu.pipeline_mode<synchronous>, transform_indices = @transform_5, window_bounds = array<i64: 128, 128>}, {pipeline_mode = #tpu.pipeline_mode<synchronous>, transform_indices = @transform_6, window_bounds = array<i64: 1, 128>}, {transform_indices = @transform_7, window_bounds = array<i64: 8, 128>}]} {
    %c0 = arith.constant 0 : index
    %c0_0 = arith.constant 0 : index
    %0 = vector.load %arg1[%c0, %c0_0] : memref<8x32xbf16, #tpu.memory_space<vmem>>, vector<8x32xbf16>
    %c0_1 = arith.constant 0 : index
    %c0_2 = arith.constant 0 : index
    %1 = vector.load %arg2[%c0_1, %c0_2] : memref<32x128xbf16, #tpu.memory_space<vmem>>, vector<32x128xbf16>
    %cst = arith.constant dense<0.000000e+00> : vector<8x128xf32>
    %2 = tpu.matmul %0, %1, %cst {dimension_numbers = #tpu.dot_dimension_numbers<[1], [0], [0], [1], [0, 0, 1, 1], [], []>} : vector<8x32xbf16>, vector<32x128xbf16>, vector<8x128xf32> -> vector<8x128xf32>
    %c0_3 = arith.constant 0 : index
    %c0_4 = arith.constant 0 : index
    %3 = vector.load %arg3[%c0_3, %c0_4] : memref<1x128xf32, #tpu.memory_space<vmem>>, vector<1x128xf32>
    %4 = vector.broadcast %3 : vector<1x128xf32> to vector<8x128xf32>
    %5 = arith.addf %2, %4 : vector<8x128xf32>
    %6 = math.tanh %5 : vector<8x128xf32>
    %7 = arith.truncf %6 : vector<8x128xf32> to vector<8x128xbf16>
    %c0_5 = arith.constant 0 : index
    %c0_6 = arith.constant 0 : index
    %8 = vector.load %arg4[%c0_5, %c0_6] : memref<128x128xbf16, #tpu.memory_space<vmem>>, vector<128x128xbf16>
    %cst_7 = arith.constant dense<0.000000e+00> : vector<8x128xf32>
    %9 = tpu.matmul %7, %8, %cst_7 {dimension_numbers = #tpu.dot_dimension_numbers<[1], [0], [0], [1], [0, 0, 1, 1], [], []>} : vector<8x128xbf16>, vector<128x128xbf16>, vector<8x128xf32> -> vector<8x128xf32>
    %c0_8 = arith.constant 0 : index
    %c0_9 = arith.constant 0 : index
    %10 = vector.load %arg5[%c0_8, %c0_9] : memref<1x128xf32, #tpu.memory_space<vmem>>, vector<1x128xf32>
    %11 = vector.broadcast %10 : vector<1x128xf32> to vector<8x128xf32>
    %12 = arith.addf %9, %11 : vector<8x128xf32>
    %13 = math.tanh %12 : vector<8x128xf32>
    %14 = arith.truncf %13 : vector<8x128xf32> to vector<8x128xbf16>
    %c0_10 = arith.constant 0 : index
    %c0_11 = arith.constant 0 : index
    %15 = vector.load %arg6[%c0_10, %c0_11] : memref<128x128xbf16, #tpu.memory_space<vmem>>, vector<128x128xbf16>
    %cst_12 = arith.constant dense<0.000000e+00> : vector<8x128xf32>
    %16 = tpu.matmul %14, %15, %cst_12 {dimension_numbers = #tpu.dot_dimension_numbers<[1], [0], [0], [1], [0, 0, 1, 1], [], []>} : vector<8x128xbf16>, vector<128x128xbf16>, vector<8x128xf32> -> vector<8x128xf32>
    %c0_13 = arith.constant 0 : index
    %c0_14 = arith.constant 0 : index
    %17 = vector.load %arg7[%c0_13, %c0_14] : memref<1x128xf32, #tpu.memory_space<vmem>>, vector<1x128xf32>
    %18 = vector.broadcast %17 : vector<1x128xf32> to vector<8x128xf32>
    %19 = arith.addf %16, %18 : vector<8x128xf32>
    %cst_15 = arith.constant dense<0xFF800000> : vector<8xf32>
    %20 = vector.multi_reduction <maximumf>, %19, %cst_15 [1] : vector<8x128xf32> to vector<8xf32>
    %21 = vector.shape_cast %20 : vector<8xf32> to vector<8x1xf32>
    %22 = vector.broadcast %21 : vector<8x1xf32> to vector<8x128xf32>
    %23 = arith.subf %19, %22 : vector<8x128xf32>
    %24 = math.exp %23 : vector<8x128xf32>
    %cst_16 = arith.constant dense<0.000000e+00> : vector<8xf32>
    %25 = vector.multi_reduction <add>, %24, %cst_16 [1] : vector<8x128xf32> to vector<8xf32>
    %26 = vector.shape_cast %25 : vector<8xf32> to vector<8x1xf32>
    %27 = vector.broadcast %26 : vector<8x1xf32> to vector<8x128xf32>
    %28 = arith.divf %24, %27 : vector<8x128xf32>
    %c0_17 = arith.constant 0 : index
    %c0_18 = arith.constant 0 : index
    %29 = vector.load %arg8[%c0_17, %c0_18] : memref<8x128xf32, #tpu.memory_space<vmem>>, vector<8x128xf32>
    tpu.vector_store %arg8[%c0_17, %c0_18], %28 {strides = array<i32>} : memref<8x128xf32, #tpu.memory_space<vmem>>, vector<8x128xf32>,
    return
  }
  func.func @transform_0(%arg0: i32) -> (i32, i32) {
    %c0_i32 = arith.constant 0 : i32
    %c0_i32_0 = arith.constant 0 : i32
    return %arg0, %c0_i32 : i32, i32
  }
  func.func @transform_1(%arg0: i32) -> (i32, i32) {
    %c0_i32 = arith.constant 0 : i32
    %c0_i32_0 = arith.constant 0 : i32
    %c0_i32_1 = arith.constant 0 : i32
    return %c0_i32, %c0_i32_0 : i32, i32
  }
  func.func @transform_2(%arg0: i32) -> (i32, i32) {
    %c0_i32 = arith.constant 0 : i32
    %c0_i32_0 = arith.constant 0 : i32
    %c0_i32_1 = arith.constant 0 : i32
    return %c0_i32, %c0_i32_0 : i32, i32
  }
  func.func @transform_3(%arg0: i32) -> (i32, i32) {
    %c0_i32 = arith.constant 0 : i32
    %c0_i32_0 = arith.constant 0 : i32
    %c0_i32_1 = arith.constant 0 : i32
    return %c0_i32, %c0_i32_0 : i32, i32
  }
  func.func @transform_4(%arg0: i32) -> (i32, i32) {
    %c0_i32 = arith.constant 0 : i32
    %c0_i32_0 = arith.constant 0 : i32
    %c0_i32_1 = arith.constant 0 : i32
    return %c0_i32, %c0_i32_0 : i32, i32
  }
  func.func @transform_5(%arg0: i32) -> (i32, i32) {
    %c0_i32 = arith.constant 0 : i32
    %c0_i32_0 = arith.constant 0 : i32
    %c0_i32_1 = arith.constant 0 : i32
    return %c0_i32, %c0_i32_0 : i32, i32
  }
  func.func @transform_6(%arg0: i32) -> (i32, i32) {
    %c0_i32 = arith.constant 0 : i32
    %c0_i32_0 = arith.constant 0 : i32
    %c0_i32_1 = arith.constant 0 : i32
    return %c0_i32, %c0_i32_0 : i32, i32
  }
  func.func @transform_7(%arg0: i32) -> (i32, i32) {
    %c0_i32 = arith.constant 0 : i32
    %c0_i32_0 = arith.constant 0 : i32
    return %arg0, %c0_i32 : i32, i32
  }
}

</mosaic_0001>

<bundles_post_ra>
// kernel: tpu_custom_call.1
= control target key start
LH: loop header
LB: loop body
LE: loop exit
PB: predicated region body
PF: predicated region fallthrough
CT: control target
= control target key end

     0   :  { %12 = vsyncpa [#allocation3], 0  ;;  %s797_s0 = inlined_call_operand.hbm [shape: bf16[8,32], index: 0, kind: input, shape index: {}]   ;;  %s798_s1 = inlined_call_operand.hbm [shape: bf16[32,128], index: 1, kind: input, shape index: {}]   ;;  %s799_s2 = inlined_call_operand.vmem [shape: f32[1,128], index: 2, kind: input, shape index: {}]   ;;  %s800_s3 = inlined_call_operand.hbm [shape: bf16[128,128], index: 3, kind: input, shape index: {}]   ;;  %s801_s4 = inlined_call_operand.vmem [shape: f32[1,128], index: 4, kind: input, shape index: {}]   ;;  %s802_s5 = inlined_call_operand.hbm [shape: bf16[128,128], index: 5, kind: input, shape index: {}]   ;;  %s803_s6 = inlined_call_operand.vmem [shape: f32[1,128], index: 6, kind: input, shape index: {}]   ;;  %s804_s7 = inlined_call_operand.hbm [shape: f32[8,128], index: 7, kind: output, shape index: {}]  }
   0x1   :  { %13 = vsyncpa [#allocation6], 0 }
   0x2   :  { %14 = vsyncpa [#allocation9], 0 }
   0x3   :  { %15 = vsyncpa [#allocation4], 0  ;;  %s646_s24 = smov [#allocation5]   ;;  %s528_s28 = scalar_lea.hbm %s798_s1, 256 }
   0x4   :  { %s31_s25 = sshll.u32 %s646_s24, 4  ;;  %p529_p0 = scmp.ne.s32.totalorder %s798_s1, %s528_s28  ;;  %s32_s25 = int_to_ptr.vmem [resolvable:$true] %s31_s25 }
   0x5   :  { %p532_p1 = scmp.lt.u32.totalorder %s528_s28, %s798_s1 }
   0x7   :  { %p534_p2 = pnand %p532_p1, %p529_p0 }
   0x9   :  { %537 = shalt.err (!%p534_p2)
}
   0xa   :  { %s538_s10 = scalar_lea.vmem %s32_s25, 256  ;;  %p543_p4 = scmp.lt.s32.totalorder %s32_s25, %s32_s25 }
   0xb   :  { %p539_p3 = scmp.ne.s32.totalorder %s32_s25, %s538_s10  ;;  %p544_p5 = scmp.lt.s32.totalorder %s538_s10, %s538_s10 }
   0xd   :  { %p545_p6 = por %p544_p5, %p543_p4 }
   0xf   :  { %p546_p7 = pnand %p545_p6, %p539_p3 }
  0x11   :  { %549 = shalt.err (!%p546_p7)
}
  0x12   :  { %s647_s11 = smov 64   ;;  %s648_s12 = smov 4  }
  0x13   :  { %37 = dma.hbm_to_vmem [thread:$0]  %s798_s1, 256, %s32_s25, [#allocation6], %s647_s11, %s647_s11, %s648_s12  }
  0x14   :  { %s649_s15 = smov [#allocation2]   ;;  %s650_s17 = smov [#allocation7]  }
  0x15   :  { %s22_s16 = sshll.u32 %s649_s15, 4  ;;  %s45_s18 = sshll.u32 %s650_s17, 4  ;;  %s23_s16 = int_to_ptr.vmem [resolvable:$true] %s22_s16  ;;  %s46_s18 = int_to_ptr.vmem [resolvable:$true] %s45_s18 }
  0x16   :  { %s550_s21 = scalar_lea.hbm %s797_s0, 64 }
  0x17   :  { %p551_p8 = scmp.ne.s32.totalorder %s797_s0, %s550_s21  ;;  %p554_p9 = scmp.lt.u32.totalorder %s550_s21, %s797_s0 }
  0x19   :  { %p556_p10 = pnand %p554_p9, %p551_p8 }
  0x1b   :  { %559 = shalt.err (!%p556_p10)
}
  0x1c   :  { %s560_s1 = scalar_lea.vmem %s23_s16, 64  ;;  %p565_p12 = scmp.lt.s32.totalorder %s23_s16, %s23_s16 }
  0x1d   :  { %p561_p11 = scmp.ne.s32.totalorder %s23_s16, %s560_s1  ;;  %p566_p13 = scmp.lt.s32.totalorder %s560_s1, %s560_s1 }
  0x1f   :  { %p567_p0 = por %p566_p13, %p565_p12 }
  0x21   :  { %p568_p1 = pnand %p567_p0, %p561_p11 }
  0x23   :  { %571 = shalt.err (!%p568_p1)
}
  0x24   :  { %25 = dma.hbm_to_vmem [thread:$0]  %s797_s0, 64, %s23_s16, [#allocation3]  }
  0x25   :  { %s572_s30 = scalar_lea.hbm %s800_s3, 1024 }
  0x26   :  { %p573_p2 = scmp.ne.s32.totalorder %s800_s3, %s572_s30  ;;  %p576_p3 = scmp.lt.u32.totalorder %s572_s30, %s800_s3 }
  0x28   :  { %p578_p4 = pnand %p576_p3, %p573_p2 }
  0x2a   :  { %581 = shalt.err (!%p578_p4)
}
  0x2b   :  { %s582_s14 = scalar_lea.vmem %s46_s18, 1024  ;;  %p587_p6 = scmp.lt.s32.totalorder %s46_s18, %s46_s18 }
  0x2c   :  { %p583_p5 = scmp.ne.s32.totalorder %s46_s18, %s582_s14  ;;  %p588_p7 = scmp.lt.s32.totalorder %s582_s14, %s582_s14 }
  0x2e   :  { %p589_p8 = por %p588_p7, %p587_p6 }
  0x30   :  { %p590_p9 = pnand %p589_p8, %p583_p5 }
  0x32   :  { %593 = shalt.err (!%p590_p9)
}
  0x33   :  { %51 = dma.hbm_to_vmem [thread:$0]  %s800_s3, 1024, %s46_s18, [#allocation6], %s647_s11, %s647_s11, %s648_s12  }
  0x34   :  { %s651_s16 = smov [#allocation8]   ;;  %s594_s21 = scalar_lea.hbm %s802_s5, 1024 }
  0x35   :  { %s59_s17 = sshll.u32 %s651_s16, 4  ;;  %p595_p10 = scmp.ne.s32.totalorder %s802_s5, %s594_s21  ;;  %s60_s17 = int_to_ptr.vmem [resolvable:$true] %s59_s17 }
  0x36   :  { %p598_p11 = scmp.lt.u32.totalorder %s594_s21, %s802_s5 }
  0x38   :  { %p600_p12 = pnand %p598_p11, %p595_p10 }
  0x3a   :  { %603 = shalt.err (!%p600_p12)
}
  0x3b   :  { %s604_s1 = scalar_lea.vmem %s60_s17, 1024  ;;  %p609_p0 = scmp.lt.s32.totalorder %s60_s17, %s60_s17 }
  0x3c   :  { %p605_p13 = scmp.ne.s32.totalorder %s60_s17, %s604_s1  ;;  %p610_p1 = scmp.lt.s32.totalorder %s604_s1, %s604_s1 }
  0x3e   :  { %p611_p2 = por %p610_p1, %p609_p0 }
  0x40   :  { %p612_p3 = pnand %p611_p2, %p605_p13 }
  0x42   :  { %615 = shalt.err (!%p612_p3)
}
  0x43   :  { %65 = dma.hbm_to_vmem [thread:$0]  %s802_s5, 1024, %s60_s17, [#allocation9], %s647_s11, %s647_s11, %s648_s12  }
  0x44   :  { %638 = dma.done.wait [#allocation3], 64  }
  0x45   :  { %639 = vsyncadd [#allocation3], 4294967232 }
  0x46   :  { %640 = dma.done.wait [#allocation6], 1280  }
  0x47   :  { %641 = vsyncadd [#allocation6], 4294966016 }
  0x48   :  { %642 = dma.done.wait [#allocation9], 1024  }
  0x49   :  { %643 = vsyncadd [#allocation9], 4294966272  ;;  %v652_v0 = vmov 0.0   ;;  %vm653_vm0 = vmmov 0   ;;  %v502_v1 = vld [vmem:[#allocation5] sm:$0xff]   ;;  %v503_v2 = vld [vmem:[#allocation5 + $0x8] sm:$0xff]  }
  0x4a   :  { %445 = vmatprep.subr.bf16.mxu0 %v652_v0  ;;  %449 = vmatprep.mubr.msk.bf16.mxu0 %vm653_vm0, %v652_v0  ;;  %v504_v3 = vld [vmem:[#allocation7] sm:$0xff]   ;;  %v505_v4 = vld [vmem:[#allocation7 + $0x8] sm:$0xff]   ;;  %vm105_vm1 = vcmask 261120   ;;  %v506_v6 = vld [vmem:[#allocation7 + $0x10] sm:$0xff]  }
  0x4b   :  { %453 = vmatprep.subr.bf16.mxu1 %v652_v0  ;;  %469 = vmatprep.mubr.msk.bf16.mxu1 %vm653_vm0, %v652_v0  ;;  %v81_v5 = vld [vmem:[#allocation2] sm:$0xf]  ;;  %v507_v7 = vld [vmem:[#allocation7 + $0x18] sm:$0xff]   ;;  %v508_v8 = vld [vmem:[#allocation7 + $0x20] sm:$0xff]  }
  0x4c   :  { %446 = vmatpush3.bf16.msra.mxu0 %v502_v1  ;;  %454 = vmatpush3.bf16.msra.mxu1 %v504_v3  ;;  %v509_v9 = vld [vmem:[#allocation7 + $0x28] sm:$0xff]   ;;  %v510_v10 = vld [vmem:[#allocation7 + $0x30] sm:$0xff]   ;;  %v511_v11 = vld [vmem:[#allocation7 + $0x38] sm:$0xff]  }
  0x4d   :  { %447 = vmatprep.subr.bf16.mxu0 %v652_v0  ;;  %455 = vmatprep.subr.bf16.mxu1 %v652_v0  ;;  %v512_v12 = vld [vmem:[#allocation8] sm:$0xff]   ;;  %v513_v13 = vld [vmem:[#allocation8 + $0x8] sm:$0xff]   ;;  %v514_v14 = vld [vmem:[#allocation8 + $0x10] sm:$0xff]  }
  0x4e   :  { %v515_v15 = vld [vmem:[#allocation8 + $0x18] sm:$0xff]   ;;  %v402_v16 = vld [vmem:[%s799_s2] ss:$0 sm:$0xff]  ;;  %v516_v24 = vld [vmem:[#allocation8 + $0x20] sm:$0xff]  }
  0x4f   :  { %v517_v25 = vld [vmem:[#allocation8 + $0x28] sm:$0xff]   ;;  %v518_v26 = vld [vmem:[#allocation8 + $0x30] sm:$0xff]   ;;  %v519_v27 = vld [vmem:[#allocation8 + $0x38] sm:$0xff]  }
  0x50   :  { %448 = vmatpush3.bf16.msra.mxu0 %v503_v2  ;;  %456 = vmatpush3.bf16.msra.mxu1 %v505_v4  ;;  %v406_v28 = vld [vmem:[%s801_s4] ss:$0 sm:$0xff]  ;;  %s654_s4 = smov [#allocation10]  }
  0x51   :  { %473 = vmatprep.subr.bf16.mxu0 %v652_v0  ;;  %457 = vmatprep.subr.bf16.mxu1 %v652_v0  ;;  %v415_v36 = vld [vmem:[%s803_s6] ss:$0 sm:$0xff]  ;;  %s391_s28 = sshll.u32 %s654_s4, 4  ;;  %s392_s28 = int_to_ptr.vmem [resolvable:$true] %s391_s28 }
  0x52   :  { %s616_s6 = scalar_lea.vmem %s392_s28, 128  ;;  %p621_p5 = scmp.lt.s32.totalorder %s392_s28, %s392_s28 }
  0x53   :  { %450 = vmatmul.mubr.msk.bf16.vlgmr.msra.gmra.mrb[0].mxu0 %vm105_vm1, %v81_v5  ;;  %p617_p4 = scmp.ne.s32.totalorder %s392_s28, %s616_s6  ;;  %p622_p6 = scmp.lt.s32.totalorder %s616_s6, %s616_s6 }
  0x54   :  { %489 = vmatprep.mubr.msk.bf16.mxu0 %vm653_vm0, %v652_v0  ;;  %458 = vmatpush3.bf16.msra.mxu1 %v506_v6 }
  0x55   :  { %459 = vmatprep.subr.bf16.mxu1 %v652_v0  ;;  %474 = vmatpush3.bf16.msra.mxu0 %v512_v12  ;;  %p623_p7 = por %p622_p6, %p621_p5 }
  0x56   :  { %475 = vmatprep.subr.bf16.mxu0 %v652_v0 }
  0x57   :  { %p624_p8 = pnand %p623_p7, %p617_p4 }
  0x58   :  { %460 = vmatpush3.bf16.msra.mxu1 %v507_v7 }
  0x59   :  { %461 = vmatprep.subr.bf16.mxu1 %v652_v0  ;;  %476 = vmatpush3.bf16.msra.mxu0 %v513_v13 }
  0x5a   :  { %477 = vmatprep.subr.bf16.mxu0 %v652_v0 }
  0x5c   :  { %462 = vmatpush3.bf16.msra.mxu1 %v508_v8 }
  0x5d   :  { %463 = vmatprep.subr.bf16.mxu1 %v652_v0  ;;  %478 = vmatpush3.bf16.msra.mxu0 %v514_v14 }
  0x5e   :  { %479 = vmatprep.subr.bf16.mxu0 %v652_v0 }
  0x60   :  { %464 = vmatpush3.bf16.msra.mxu1 %v509_v9 }
  0x61   :  { %465 = vmatprep.subr.bf16.mxu1 %v652_v0  ;;  %480 = vmatpush3.bf16.msra.mxu0 %v515_v15 }
  0x62   :  { %481 = vmatprep.subr.bf16.mxu0 %v652_v0 }
  0x64   :  { %466 = vmatpush3.bf16.msra.mxu1 %v510_v10 }
  0x65   :  { %467 = vmatprep.subr.bf16.mxu1 %v652_v0  ;;  %482 = vmatpush3.bf16.msra.mxu0 %v516_v24 }
  0x66   :  { %483 = vmatprep.subr.bf16.mxu0 %v652_v0 }
  0x68   :  { %468 = vmatpush3.bf16.msra.mxu1 %v511_v11 }
  0x69   :  { %484 = vmatpush3.bf16.msra.mxu0 %v517_v25 }
  0x6a   :  { %485 = vmatprep.subr.bf16.mxu0 %v652_v0 }
  0x6d   :  { %486 = vmatpush3.bf16.msra.mxu0 %v518_v26 }
  0x6e   :  { %487 = vmatprep.subr.bf16.mxu0 %v652_v0 }
  0x71   :  { %488 = vmatpush3.bf16.msra.mxu0 %v519_v27 }
 0x126   :  { %v143_v17 = vpop.f32.mrb[0].mxu0 }
 0x127   :  { %v144_v18 = vadd.f32 %v402_v16, %v143_v17  ;;  %v451_v19 = vpop.f32.mrb[1].mxu0 }
 0x128   :  { %v146_v20 = vpop.f32.mrb[2].mxu0 }
 0x129   :  { %520 = vtanh.f32 %v144_v18  ;;  %v452_v21 = vpop.f32.mrb[3].mxu0 }
 0x133   :  { %v521_v22 = vpop.eup %520 }
 0x134   :  { %v150_v23 = vpack.c.bf16 %v521_v22, %v521_v22 }
 0x136   :  { %470 = vmatmul.mubr.bf16.vlgmr.msra.gmra.mrb[0].mxu1 %v150_v23 }
 0x209   :  { %v256_v29 = vpop.f32.mrb[0].mxu1 }
 0x20a   :  { %v257_v30 = vadd.f32 %v406_v28, %v256_v29  ;;  %v471_v31 = vpop.f32.mrb[1].mxu1 }
 0x20b   :  { %v259_v32 = vpop.f32.mrb[2].mxu1 }
 0x20c   :  { %522 = vtanh.f32 %v257_v30  ;;  %v472_v33 = vpop.f32.mrb[3].mxu1 }
 0x216   :  { %v523_v34 = vpop.eup %522 }
 0x217   :  { %v263_v35 = vpack.c.bf16 %v523_v34, %v523_v34 }
 0x219   :  { %490 = vmatmul.mubr.bf16.vlgmr.msra.gmra.mrb[4].mxu0 %v263_v35 }
 0x2ec   :  { %v369_v37 = vpop.f32.mrb[4].mxu0 }
 0x2ed   :  { %v370_v38 = vadd.f32 %v415_v36, %v369_v37  ;;  %v491_v39 = vpop.f32.mrb[5].mxu0 }
 0x2ee   :  { %v372_v40 = vpop.f32.mrb[6].mxu0 }
 0x2ef   :  { %375 = vmax.xlane.f32.xlu0 %v370_v38  ;;  %v492_v41 = vpop.f32.mrb[7].mxu0 }
 0x37c   :  { %v376_v42 = vpop.xlane.xlu0 %375 }
 0x37d   :  { %v377_v43 = vsub.f32 %v370_v38, %v376_v42 }
 0x37f   :  { %v378_v44 = vmul.f32 1.442695, %v377_v43 }
 0x381   :  { %524 = vpow2.f32 %v378_v44 }
 0x38b   :  { %v525_v45 = vpop.eup %524 }
 0x38c   :  { %380 = vadd.xlane.f32.xlu0 %v525_v45 }
 0x419   :  { %v381_v46 = vpop.xlane.xlu0 %380 }
 0x41a   :  { %526 = vrcp.f32 %v381_v46 }
 0x424   :  { %v527_v47 = vpop.eup %526 }
 0x425   :  { %v383_v48 = vmul.f32 %v527_v47, %v525_v45 }
 0x427   :  { %384 = vst [vmem:[#allocation10] sm:$0xff] %v383_v48 }
 0x428   :  { %627 = shalt.err (!%p624_p8)
}
 0x429   :  { %s628_s8 = scalar_lea.hbm %s804_s7, 128 }
 0x42a   :  { %p629_p9 = scmp.ne.s32.totalorder %s804_s7, %s628_s8  ;;  %p632_p10 = scmp.lt.u32.totalorder %s628_s8, %s804_s7 }
 0x42c   :  { %p634_p11 = pnand %p632_p10, %p629_p9 }
 0x42e   :  { %637 = shalt.err (!%p634_p11)
}
 0x42f   :  { %394 = dma.vmem_to_hbm [thread:$0]  %s392_s28, 128, %s804_s7, [#allocation4]  }
 0x430   :  { %644 = dma.done.wait [#allocation4], 128  }
 0x431   :  { %645 = vsyncadd [#allocation4], 4294967168 }
 0x432   :  { %398 = vsyncpa [#allocation3], 1 }
 0x433   :  { %399 = vsyncpa [#allocation6], 1 }
 0x434   :  { %400 = vsyncpa [#allocation9], 1 }
 0x435   :  { %401 = vsyncpa [#allocation4], 1 }

</bundles_post_ra>
